<compile_context>
chip_gen: v6e
topology: v6e:2x2x1
jax: 0.10.0
libtpu: 0.0.40
codegen_flags: <defaults>
</compile_context>

<pallas_src>
import numpy as np
import jax
import jax.numpy as jnp
from jax import lax
from jax.experimental import pallas as pl
from jax.experimental.pallas import tpu as pltpu

LANE = 128          # lanes (last dim of every block)
MAX_TM = 1024       # max sublane rows per block: 1024x128 int32 = 512 KiB / block
CHUNK_ROWS = 64     # rows processed per unrolled inner chunk (keeps vreg pressure low)

VAL_PAD = -2        # padding sentinel for the value vector  (never a real node id, never a query)
NULL_ID = -1        # sentinel id for "empty frontier" samples (never matches ids >= 0 or VAL_PAD)
QUERY_PAD = -3      # padding sentinel for the query vector  (never matches values or VAL_PAD)


# ----------------------------------------------------------------------------
# Pallas kernels
# ----------------------------------------------------------------------------

def _match_any(ids, q_ref):
    """bool[ids.shape]: True where ids equals any query id in SMEM q_ref."""
    k_total = q_ref.shape[0]
    acc = jnp.zeros(ids.shape, dtype=jnp.bool_)
    if k_total <= 64:
        # Fully unrolled: scalar SMEM loads + compare/OR co-issue across the
        # 4 VALU slots and overlap with the vld/vst stream.
        for k in range(k_total):
            acc = jnp.logical_or(acc, ids == q_ref[k])
        return acc
    # Large K (final dedup on big subgraphs): partially-unrolled rolled loop.
    body = lambda k, a: jnp.logical_or(a, ids == q_ref[k])
    return lax.fori_loop(0, k_total, body, acc, unroll=8)


def _membership_kernel(q_ref, vals_ref, mask_ref):
    """mask[m] = 1 iff vals[m] equals any query id.

    q_ref    : SMEM int32 [K]         (scalar-prefetched query ids)
    vals_ref : VMEM int32 [TM, LANE]  (tile of the value vector, padded with VAL_PAD)
    mask_ref : VMEM int8  [TM, LANE]
    """
    tm = vals_ref.shape[0]
    for r0 in range(0, tm, CHUNK_ROWS):
        ch = min(CHUNK_ROWS, tm - r0)                 # tm is a multiple of 32 -> aligned chunks
        v = vals_ref[pl.ds(r0, ch), :]
        mask_ref[pl.ds(r0, ch), :] = _match_any(v, q_ref).astype(jnp.int8)


def _iota_membership_kernel(q_ref, mask_ref):
    """mask[n] = 1 iff node id n equals any query id; node ids synthesized in-VMEM.

    q_ref    : SMEM int32 [K]
    mask_ref : VMEM int8  [TM, LANE]   (global node id = program_id*TM*LANE + row*LANE + lane)
    """
    tm, lane = mask_ref.shape
    base = pl.program_id(0) * (tm * lane)
    for r0 in range(0, tm, CHUNK_ROWS):
        ch = min(CHUNK_ROWS, tm - r0)
        row = lax.broadcasted_iota(jnp.int32, (ch, lane), 0)
        col = lax.broadcasted_iota(jnp.int32, (ch, lane), 1)
        ids = base + (r0 + row) * lane + col
        mask_ref[pl.ds(r0, ch), :] = _match_any(ids, q_ref).astype(jnp.int8)


# ----------------------------------------------------------------------------
# Tiling helpers + pallas_call wrappers
# ----------------------------------------------------------------------------

def _tiling(m):
    """Pick (rows_per_block, num_blocks) for an m-element id vector."""
    rows = -(-m // LANE)
    if rows <= MAX_TM:
        tm = max(32, ((rows + 31) // 32) * 32)        # int8 output tile wants sublane % 32 == 0
        return tm, 1
    tm = MAX_TM
    nblk = -(-rows // tm)
    if nblk % 2:                                      # even grid -> both v7x TensorCores get blocks
        nblk += 1
    return tm, nblk


def _pad_values(values, tm, nblk):
    """Pad an id vector with VAL_PAD and reshape to (tm*nblk, LANE) int32."""
    m = values.shape[0]
    m_pad = tm * nblk * LANE
    vals = jnp.full((m_pad,), VAL_PAD, dtype=jnp.int32).at[:m].set(values.astype(jnp.int32))
    return vals.reshape(m_pad // LANE, LANE)


def _pad_queries(queries):
    """Pad queries to a power-of-two length (min 8) with QUERY_PAD -> fewer recompiles."""
    q = queries.astype(jnp.int32)
    k = int(q.shape[0])
    k_pad = max(8, pl.next_power_of_2(max(k, 1)))
    if k_pad == k:
        return q
    return jnp.full((k_pad,), QUERY_PAD, dtype=jnp.int32).at[:k].set(q)


def _membership_padded(vals2d, queries, tm, nblk):
    """Pallas membership on an already-padded (rows, LANE) int32 value array -> int8 mask."""
    rows = vals2d.shape[0]
    out = pl.pallas_call(
        _membership_kernel,
        out_shape=jax.ShapeDtypeStruct((rows, LANE), jnp.int8),
        grid_spec=pltpu.PrefetchScalarGridSpec(
            num_scalar_prefetch=1,
            grid=(nblk,),
            in_specs=[pl.BlockSpec((tm, LANE), lambda i, q: (i, 0))],
            out_specs=pl.BlockSpec((tm, LANE), lambda i, q: (i, 0)),
        ),
        compiler_params=pltpu.CompilerParams(
            dimension_semantics=("parallel",)),
    )(_pad_queries(queries), vals2d)
    return out.reshape(rows * LANE)


def membership(values, queries):
    """General helper: int8 mask[M], mask[m] = values[m] in queries (Pallas-backed)."""
    m = values.shape[0]
    tm, nblk = _tiling(m)
    vals2d = _pad_values(values, tm, nblk)
    return _membership_padded(vals2d, queries, tm, nblk)[:m]


def node_set_mask(num_nodes, queries):
    """int8 mask over node ids [0, num_nodes): mask[n] = n in queries.  No HBM input stream."""
    tm, nblk = _tiling(num_nodes)
    rows = tm * nblk
    out = pl.pallas_call(
        _iota_membership_kernel,
        out_shape=jax.ShapeDtypeStruct((rows, LANE), jnp.int8),
        grid_spec=pltpu.PrefetchScalarGridSpec(
            num_scalar_prefetch=1,
            grid=(nblk,),
            in_specs=[],
            out_specs=pl.BlockSpec((tm, LANE), lambda i, q: (i, 0)),
        ),
        compiler_params=pltpu.CompilerParams(
            dimension_semantics=("parallel",)),
    )(_pad_queries(queries))
    return out.reshape(rows * LANE)[:num_nodes]


# ----------------------------------------------------------------------------
# random_subgraph_sampler forward (JAX glue around the Pallas membership kernels)
# ----------------------------------------------------------------------------

def node_sampler(key, ids_per_cls_train, budget, max_ratio_per_cls=1.0):
    """Per-class random sample without replacement (glue; mirrors random.sample)."""
    store = []
    for ids in ids_per_cls_train:
        ids_arr = jnp.asarray(ids, dtype=jnp.int32)
        if isinstance(budget, int):
            budget_ = min(budget, int(max_ratio_per_cls * len(ids)))
        else:
            budget_ = int(budget * len(ids))
        key, sub = jax.random.split(key)
        perm = jax.random.permutation(sub, ids_arr)
        store.append(perm[:budget_])
    return jnp.concatenate(store), key


def nei_sampler(key, center_nodes, edge_src, edge_dst, num_nodes, nei_budget):
    """Hop-wise neighbor expansion; membership tests run in the Pallas kernels."""
    e = edge_dst.shape[0]
    tm, nblk = _tiling(e)
    # Hoisted out of the hop loop: pad/reshape edge_dst ONCE, reuse every hop.
    edge_dst2d = _pad_values(edge_dst, tm, nblk)

    current = center_nodes.astype(jnp.int32)
    retained = [current]
    for b in nei_budget:
        # edge_mask[e] = 1 iff edge_dst[e] is in the current frontier  (Pallas, int8 mask)
        # TODO(synk): DGL in_edges repeats edges per duplicated frontier node; the mask-based
        # test dedups the frontier, so neighbor multiplicities differ from random.choices over
        # the concatenated neighbor list.
        edge_mask = _membership_padded(edge_dst2d, current, tm, nblk)[:e]
        # Single re-read of the mask per hop: cnt is just the last cumsum entry.
        csum = jnp.cumsum(edge_mask.astype(jnp.int32))
        cnt = csum[-1]
        key, sub = jax.random.split(key)
        # random.choices(neighbors, k=b): uniform with replacement over matching edges
        r = jax.random.randint(sub, (b,), 0, jnp.maximum(cnt, 1))
        edge_idx = jnp.clip(jnp.searchsorted(csum, r + 1, side="left"), 0, e - 1)
        sampled = edge_src[edge_idx].astype(jnp.int32)
        # Empty frontier: emit NULL_ID sentinels (never match any node id >= 0) instead of
        # silently sampling unrelated nodes.
        sampled = jnp.where(cnt > 0, sampled, jnp.full((b,), NULL_ID, jnp.int32))
        current = sampled
        retained.append(sampled)
    all_ids = jnp.concatenate(retained)
    # list(set(retained_nodes)) -> dedup node-set membership mask; node ids synthesized
    # in-VMEM (iota), so only the N-element int8 mask touches HBM.
    all_mask = node_set_mask(num_nodes, all_ids)
    return all_mask, key


def random_subgraph_sampler_forward(graph, center_node_budget, nei_budget,
                                    gnn, ids_per_cls, key):
    """Returns (center_nodes_selected [int32 ids], all_nodes_selected [int8 mask over N])."""
    del gnn  # unused, as in the reference module
    center_nodes, key = node_sampler(key, ids_per_cls, center_node_budget)
    all_mask, key = nei_sampler(key, center_nodes, graph["edge_src"],
                                graph["edge_dst"], graph["num_nodes"], nei_budget)
    return center_nodes, all_mask


if __name__ == "__main__":
    key = jax.random.PRNGKey(0)

    # Small synthetic graph: 64 nodes, 256 directed edges.
    num_nodes = 64
    num_edges = 256
    key, k_src, k_dst = jax.random.split(key, 3)
    edge_src = jax.random.randint(k_src, (num_edges,), 0, num_nodes, dtype=jnp.int32)
    edge_dst = jax.random.randint(k_dst, (num_edges,), 0, num_nodes, dtype=jnp.int32)
    graph = {"edge_src": edge_src, "edge_dst": edge_dst, "num_nodes": num_nodes}

    # Two classes partitioning the node ids.
    ids_per_cls = [list(range(0, 32)), list(range(32, 64))]
    center_node_budget = 4
    nei_budget = [8, 8]

    center_nodes, all_mask = random_subgraph_sampler_forward(
        graph, center_node_budget, nei_budget, gnn=None,
        ids_per_cls=ids_per_cls, key=key)

    center_nodes = jax.block_until_ready(center_nodes)
    all_mask = jax.block_until_ready(all_mask)

    # Sanity: all center nodes must be in the selected-node set.
    cn = np.asarray(center_nodes)
    am = np.asarray(all_mask)
    assert am.shape == (num_nodes,)
    assert np.all(am[cn] == 1)
    assert int(am.sum()) >= len(cn)

    # Extra sanity on the standalone membership helper.
    mm = np.asarray(membership(edge_dst, center_nodes))
    ref = np.isin(np.asarray(edge_dst), cn).astype(np.int8)
    assert np.array_equal(mm, ref)

    print("KERNEL_OK")
</pallas_src>

<mosaic_0001>
module attributes {stable_mosaic.version = 11 : i64} {
  func.func @_membership_kernel(%arg0: i32, %arg1: memref<8xi32, #tpu.memory_space<smem>>, %arg2: memref<32x128xi32, #tpu.memory_space<vmem>>, %arg3: memref<32x128xi8, #tpu.memory_space<vmem>>) attributes {dimension_semantics = [#tpu.dimension_semantics<parallel>], iteration_bounds = array<i64: 1>, scalar_prefetch = 1 : i64, scratch_operands = 0 : i64, tpu.core_type = #tpu.core_type<tc>, window_params = [{transform_indices = @transform_0, window_bounds = array<i64: 32, 128>}, {transform_indices = @transform_1, window_bounds = array<i64: 32, 128>}]} {
    %c0 = arith.constant 0 : index
    %c0_0 = arith.constant 0 : index
    %0 = vector.load %arg2[%c0, %c0_0] : memref<32x128xi32, #tpu.memory_space<vmem>>, vector<32x128xi32>
    %false = arith.constant false
    %1 = vector.broadcast %false : i1 to vector<32x128xi1>
    %c0_1 = arith.constant 0 : index
    %2 = memref.load %arg1[%c0_1] : memref<8xi32, #tpu.memory_space<smem>>
    %3 = vector.broadcast %2 : i32 to vector<32x128xi32>
    %4 = arith.cmpi eq, %0, %3 : vector<32x128xi32>
    %5 = arith.ori %1, %4 : vector<32x128xi1>
    %c1 = arith.constant 1 : index
    %6 = memref.load %arg1[%c1] : memref<8xi32, #tpu.memory_space<smem>>
    %7 = vector.broadcast %6 : i32 to vector<32x128xi32>
    %8 = arith.cmpi eq, %0, %7 : vector<32x128xi32>
    %9 = arith.ori %5, %8 : vector<32x128xi1>
    %c2 = arith.constant 2 : index
    %10 = memref.load %arg1[%c2] : memref<8xi32, #tpu.memory_space<smem>>
    %11 = vector.broadcast %10 : i32 to vector<32x128xi32>
    %12 = arith.cmpi eq, %0, %11 : vector<32x128xi32>
    %13 = arith.ori %9, %12 : vector<32x128xi1>
    %c3 = arith.constant 3 : index
    %14 = memref.load %arg1[%c3] : memref<8xi32, #tpu.memory_space<smem>>
    %15 = vector.broadcast %14 : i32 to vector<32x128xi32>
    %16 = arith.cmpi eq, %0, %15 : vector<32x128xi32>
    %17 = arith.ori %13, %16 : vector<32x128xi1>
    %c4 = arith.constant 4 : index
    %18 = memref.load %arg1[%c4] : memref<8xi32, #tpu.memory_space<smem>>
    %19 = vector.broadcast %18 : i32 to vector<32x128xi32>
    %20 = arith.cmpi eq, %0, %19 : vector<32x128xi32>
    %21 = arith.ori %17, %20 : vector<32x128xi1>
    %c5 = arith.constant 5 : index
    %22 = memref.load %arg1[%c5] : memref<8xi32, #tpu.memory_space<smem>>
    %23 = vector.broadcast %22 : i32 to vector<32x128xi32>
    %24 = arith.cmpi eq, %0, %23 : vector<32x128xi32>
    %25 = arith.ori %21, %24 : vector<32x128xi1>
    %c6 = arith.constant 6 : index
    %26 = memref.load %arg1[%c6] : memref<8xi32, #tpu.memory_space<smem>>
    %27 = vector.broadcast %26 : i32 to vector<32x128xi32>
    %28 = arith.cmpi eq, %0, %27 : vector<32x128xi32>
    %29 = arith.ori %25, %28 : vector<32x128xi1>
    %c7 = arith.constant 7 : index
    %30 = memref.load %arg1[%c7] : memref<8xi32, #tpu.memory_space<smem>>
    %31 = vector.broadcast %30 : i32 to vector<32x128xi32>
    %32 = arith.cmpi eq, %0, %31 : vector<32x128xi32>
    %33 = arith.ori %29, %32 : vector<32x128xi1>
    %34 = arith.extui %33 : vector<32x128xi1> to vector<32x128xi8>
    %c0_2 = arith.constant 0 : index
    %c0_3 = arith.constant 0 : index
    %35 = vector.load %arg3[%c0_2, %c0_3] : memref<32x128xi8, #tpu.memory_space<vmem>>, vector<32x128xi8>
    tpu.vector_store %arg3[%c0_2, %c0_3], %34 {strides = array<i32>} : memref<32x128xi8, #tpu.memory_space<vmem>>, vector<32x128xi8>,
    return
  }
  func.func @transform_0(%arg0: i32, %arg1: memref<8xi32, #tpu.memory_space<smem>>) -> (i32, i32) {
    %c0_i32 = arith.constant 0 : i32
    %c0_i32_0 = arith.constant 0 : i32
    return %arg0, %c0_i32 : i32, i32
  }
  func.func @transform_1(%arg0: i32, %arg1: memref<8xi32, #tpu.memory_space<smem>>) -> (i32, i32) {
    %c0_i32 = arith.constant 0 : i32
    %c0_i32_0 = arith.constant 0 : i32
    return %arg0, %c0_i32 : i32, i32
  }
}

</mosaic_0001>

<bundles_post_ra>
// kernel: tpu_custom_call.1
= control target key start
LH: loop header
LB: loop body
LE: loop exit
PB: predicated region body
PF: predicated region fallthrough
CT: control target
= control target key end

     0   :  { %s197_s9 = smov [#allocation3]   ;;  %s267_s0 = inlined_call_operand.hbm [shape: s32[8], index: 0, kind: input, shape index: {}]   ;;  %s268_s1 = inlined_call_operand.hbm [shape: s32[32,128], index: 1, kind: input, shape index: {}]   ;;  %s269_s2 = inlined_call_operand.hbm [shape: s8[32,128], index: 2, kind: output, shape index: {}]  }
   0x1   :  { %8 = dma.hbm_to_smem %s267_s0, 16, %s197_s9, [#allocation2] }
   0x2   :  { %191 = dma.done.wait [#allocation2], 16 }
   0x3   :  { %192 = vsyncadd [#allocation2], 4294967280 }
   0x4   :  { %10 = sfence }
   0x5   :  { %11 = vsyncpa [#allocation5], 0 }
   0x6   :  { %12 = vsyncpa [#allocation6], 0  ;;  %s198_s12 = smov [#allocation4]  }
   0x7   :  { %s18_s13 = sshll.u32 %s198_s12, 4  ;;  %s19_s13 = int_to_ptr.vmem [resolvable:$true] %s18_s13 }
   0x8   :  { %s159_s14 = scalar_lea.vmem %s19_s13, 512  ;;  %p164_p1 = scmp.lt.s32.totalorder %s19_s13, %s19_s13 }
   0x9   :  { %p160_p0 = scmp.ne.s32.totalorder %s19_s13, %s159_s14  ;;  %p165_p2 = scmp.lt.s32.totalorder %s159_s14, %s159_s14 }
   0xb   :  { %p166_p3 = por %p165_p2, %p164_p1 }
   0xd   :  { %p167_p4 = pnand %p166_p3, %p160_p0 }
   0xf   :  { %170 = shalt.err (!%p167_p4)
}
  0x10   :  { %s199_s15 = smov 128   ;;  %s200_s16 = smov 8  }
  0x11   :  { %24 = dma.hbm_to_vmem [thread:$0]  %s268_s1, 512, %s19_s13, [#allocation5], %s199_s15, %s199_s15, %s200_s16  }
  0x12   :  { %193 = dma.done.wait [#allocation5], 512  }
  0x13   :  { %194 = vsyncadd [#allocation5], 4294966784  ;;  %s34_s0 = sld [smem:[#allocation3]]  ;;  %v224_v0 = vld [vmem:[#allocation4] sm:$0xff]  ;;  %v226_v1 = vld [vmem:[#allocation4 + $0x8] sm:$0xff]  ;;  %s201_s25 = smov [#allocation7]  }
  0x14   :  { %s130_s19 = sld [smem:[#allocation3 + $0x1]]  ;;  %v228_v2 = vld [vmem:[#allocation4 + $0x10] sm:$0xff]  ;;  %v230_v4 = vld [vmem:[#allocation4 + $0x18] sm:$0xff]  ;;  %s121_s26 = sshll.u32 %s201_s25, 4  ;;  %v202_v12 = vmov 0   ;;  %s122_s26 = int_to_ptr.vmem [resolvable:$true] %s121_s26 }
  0x15   :  { %s131_s20 = sld [smem:[#allocation3 + $0x2]]  ;;  %s171_s27 = scalar_lea.vmem %s122_s26, 128 }
  0x16   :  { %s132_s21 = sld [smem:[#allocation3 + $0x3]]  ;;  %p172_p5 = scmp.ne.s32.totalorder %s122_s26, %s171_s27 }
  0x17   :  { %s133_s1 = sld [smem:[#allocation3 + $0x4]]  ;;  %p176_p6 = scmp.lt.s32.totalorder %s122_s26, %s122_s26 }
  0x18   :  { %s134_s22 = sld [smem:[#allocation3 + $0x5]]  ;;  %p177_p7 = scmp.lt.s32.totalorder %s171_s27, %s171_s27 }
  0x19   :  { %v35_v3 = vstv %s34_s0  ;;  %s135_s23 = sld [smem:[#allocation3 + $0x6]] }
  0x1a   :  { %vm36_vm0 = vcmp.eq.s32.totalorder %v224_v0, %v35_v3  ;;  %vm37_vm1 = vcmp.eq.s32.totalorder %v226_v1, %v35_v3  ;;  %v41_v5 = vstv %s130_s19  ;;  %vm38_vm2 = vcmp.eq.s32.totalorder %v228_v2, %v35_v3  ;;  %s136_s24 = sld [smem:[#allocation3 + $0x7]]  ;;  %p178_p8 = por %p177_p7, %p176_p6 }
  0x1b   :  { %vm42_vm3 = vcmp.eq.s32.totalorder %v224_v0, %v41_v5  ;;  %vm43_vm4 = vcmp.eq.s32.totalorder %v226_v1, %v41_v5  ;;  %vm44_vm5 = vcmp.eq.s32.totalorder %v228_v2, %v41_v5  ;;  %vm39_vm6 = vcmp.eq.s32.totalorder %v230_v4, %v35_v3 }
  0x1c   :  { %vm45_vm7 = vcmp.eq.s32.totalorder %v230_v4, %v41_v5  ;;  %vm46_vm8 = vmor %vm36_vm0, %vm42_vm3  ;;  %v51_v6 = vstv %s131_s20  ;;  %v61_v7 = vstv %s132_s21  ;;  %p179_p9 = pnand %p178_p8, %p172_p5 }
  0x1d   :  { %vm47_vm9 = vmor %vm37_vm1, %vm43_vm4  ;;  %vm52_vm10 = vcmp.eq.s32.totalorder %v224_v0, %v51_v6  ;;  %vm53_vm12 = vcmp.eq.s32.totalorder %v226_v1, %v51_v6  ;;  %vm54_vm14 = vcmp.eq.s32.totalorder %v228_v2, %v51_v6  ;;  %vm55_vm15 = vcmp.eq.s32.totalorder %v230_v4, %v51_v6 }
  0x1e   :  { %vm48_vm11 = vmor %vm38_vm2, %vm44_vm5  ;;  %vm62_vm1 = vcmp.eq.s32.totalorder %v224_v0, %v61_v7  ;;  %vm63_vm2 = vcmp.eq.s32.totalorder %v226_v1, %v61_v7  ;;  %v71_v8 = vstv %s133_s1  ;;  %v81_v9 = vstv %s134_s22 }
  0x1f   :  { %vm49_vm13 = vmor %vm39_vm6, %vm45_vm7  ;;  %vm64_vm6 = vcmp.eq.s32.totalorder %v228_v2, %v61_v7  ;;  %vm65_vm7 = vcmp.eq.s32.totalorder %v230_v4, %v61_v7  ;;  %v91_v10 = vstv %s135_s23 }
  0x20   :  { %vm56_vm0 = vmor %vm46_vm8, %vm52_vm10  ;;  %v101_v11 = vstv %s136_s24 }
  0x21   :  { %vm57_vm3 = vmor %vm47_vm9, %vm53_vm12  ;;  %vm72_vm9 = vcmp.eq.s32.totalorder %v224_v0, %v71_v8 }
  0x22   :  { %vm58_vm4 = vmor %vm48_vm11, %vm54_vm14  ;;  %vm73_vm11 = vcmp.eq.s32.totalorder %v226_v1, %v71_v8 }
  0x23   :  { %vm59_vm5 = vmor %vm49_vm13, %vm55_vm15  ;;  %vm74_vm13 = vcmp.eq.s32.totalorder %v228_v2, %v71_v8  ;;  %vm75_vm15 = vcmp.eq.s32.totalorder %v230_v4, %v71_v8 }
  0x24   :  { %vm66_vm8 = vmor %vm56_vm0, %vm62_vm1 }
  0x25   :  { %vm67_vm10 = vmor %vm57_vm3, %vm63_vm2  ;;  %vm82_vm2 = vcmp.eq.s32.totalorder %v224_v0, %v81_v9 }
  0x26   :  { %vm68_vm12 = vmor %vm58_vm4, %vm64_vm6  ;;  %vm83_vm4 = vcmp.eq.s32.totalorder %v226_v1, %v81_v9 }
  0x27   :  { %vm69_vm14 = vmor %vm59_vm5, %vm65_vm7  ;;  %vm84_vm5 = vcmp.eq.s32.totalorder %v228_v2, %v81_v9  ;;  %vm85_vm7 = vcmp.eq.s32.totalorder %v230_v4, %v81_v9 }
  0x28   :  { %vm76_vm0 = vmor %vm66_vm8, %vm72_vm9 }
  0x29   :  { %vm77_vm1 = vmor %vm67_vm10, %vm73_vm11  ;;  %vm92_vm10 = vcmp.eq.s32.totalorder %v224_v0, %v91_v10 }
  0x2a   :  { %vm78_vm3 = vmor %vm68_vm12, %vm74_vm13  ;;  %vm93_vm12 = vcmp.eq.s32.totalorder %v226_v1, %v91_v10 }
  0x2b   :  { %vm79_vm6 = vmor %vm69_vm14, %vm75_vm15  ;;  %vm94_vm14 = vcmp.eq.s32.totalorder %v228_v2, %v91_v10  ;;  %vm95_vm15 = vcmp.eq.s32.totalorder %v230_v4, %v91_v10 }
  0x2c   :  { %vm86_vm8 = vmor %vm76_vm0, %vm82_vm2 }
  0x2d   :  { %vm87_vm9 = vmor %vm77_vm1, %vm83_vm4  ;;  %vm102_vm1 = vcmp.eq.s32.totalorder %v224_v0, %v101_v11 }
  0x2e   :  { %vm88_vm11 = vmor %vm78_vm3, %vm84_vm5  ;;  %vm103_vm3 = vcmp.eq.s32.totalorder %v226_v1, %v101_v11 }
  0x2f   :  { %vm89_vm13 = vmor %vm79_vm6, %vm85_vm7  ;;  %vm104_vm6 = vcmp.eq.s32.totalorder %v228_v2, %v101_v11  ;;  %vm105_vm7 = vcmp.eq.s32.totalorder %v230_v4, %v101_v11 }
  0x30   :  { %vm96_vm0 = vmor %vm86_vm8, %vm92_vm10 }
  0x31   :  { %vm97_vm2 = vmor %vm87_vm9, %vm93_vm12 }
  0x32   :  { %vm98_vm4 = vmor %vm88_vm11, %vm94_vm14 }
  0x33   :  { %vm99_vm5 = vmor %vm89_vm13, %vm95_vm15 }
  0x34   :  { %vm106_vm8 = vmor %vm96_vm0, %vm102_vm1 }
  0x35   :  { %vm107_vm10 = vmor %vm97_vm2, %vm103_vm3 }
  0x36   :  { %vm108_vm9 = vmor %vm98_vm4, %vm104_vm6 }
  0x37   :  { %vm109_vm12 = vmor %vm99_vm5, %vm105_vm7 }
  0x38   :  { %vm110_vm11 = vmpackc.low %vm107_vm10, %vm106_vm8 }
  0x39   :  { %vm111_vm14 = vmpackc.low %vm109_vm12, %vm108_vm9 }
  0x3a   :  { %vm112_vm13 = vmpackc.even %vm111_vm14, %vm110_vm11 }
  0x3b   :  { %v113_v13 = vsel %vm112_vm13, 16843009, %v202_v12 }
  0x3c   :  { %114 = vst [vmem:[#allocation7] sm:$0xff] %v113_v13 }
  0x3d   :  { %182 = shalt.err (!%p179_p9)
}
  0x3e   :  { %124 = dma.vmem_to_hbm [thread:$0]  %s122_s26, 128, %s269_s2, [#allocation6]  }
  0x3f   :  { %195 = dma.done.wait [#allocation6], 128  }
  0x40   :  { %196 = vsyncadd [#allocation6], 4294967168 }
  0x41   :  { %128 = vsyncpa [#allocation5], 1 }
  0x42   :  { %129 = vsyncpa [#allocation6], 1 }

</bundles_post_ra>
